<compile_context>
chip_gen: v5e
topology: v5e:2x2
jax: 0.10.0
libtpu: 0.0.40
codegen_flags: <defaults>
</compile_context>

<pallas_src>
import functools

import jax
import jax.numpy as jnp
from jax.experimental import pallas as pl
from jax.experimental.pallas import tpu as pltpu


def _patch_embed_kernel(x_ref, w_ref, pe_ref, o_ref, *, compute_dtype):
    # x_ref : (TB, TPP, ps)   zero-padded genes, one batch tile x patch chunk
    # w_ref : (ps, E)         proj weight, already transposed (w.T)
    # pe_ref: (TPP, E)        sinusoidal positional encoding with bias folded in
    # o_ref : (TB, TPP, E)
    tb, tpp, ps = x_ref.shape
    e = w_ref.shape[1]

    x = x_ref[...].astype(compute_dtype)          # no-op when already f32
    w = w_ref[...].astype(compute_dtype)

    # Batched matmul over the batch-tile dim (flash-attention style einsum):
    # contraction depth is exactly patch_size -> no redundant MXU work.
    w_b = jnp.broadcast_to(w[None, :, :], (tb, ps, e))
    y = jax.lax.dot_general(
        x, w_b,
        dimension_numbers=(((2,), (1,)), ((0,), (0,))),
        preferred_element_type=jnp.float32,
    )                                             # (TB, TPP, E) f32

    o_ref[...] = (y + pe_ref[...][None, :, :]).astype(o_ref.dtype)


def _sinusoidal_pe(n_patch: int, embed_dim: int) -> jnp.ndarray:
    """Matches add_absolute_positional_encoding's pe (T, D)."""
    assert embed_dim % 2 == 0, "Embedding dimension must be even."
    pos = jnp.arange(n_patch, dtype=jnp.float32)[:, None]          # (T, 1)
    dim = jnp.arange(embed_dim // 2, dtype=jnp.float32)[None, :]   # (1, D/2)
    angle_rates = 1.0 / jnp.power(10000.0, 2.0 * dim / embed_dim)
    angle_rads = pos * angle_rates                                  # (T, D/2)
    pe = jnp.zeros((n_patch, embed_dim), dtype=jnp.float32)
    pe = pe.at[:, 0::2].set(jnp.sin(angle_rads))
    pe = pe.at[:, 1::2].set(jnp.cos(angle_rads))
    return pe


def _round_up(x: int, m: int) -> int:
    return -(-x // m) * m


def _pick_tiles(N: int, P: int, ps: int, E: int, itemsize: int):
    """Choose (batch_tile, patch_tile, vmem_limit_bytes).

    VMEM accounting (review fix): every BlockSpec operand is double-buffered by
    the pipeline, the x tile's narrow last dim (patch_size) is lane-padded to
    128 in VMEM, and the f32 matmul result is live before the +pe / cast.
    """
    lane = lambda d: _round_up(max(int(d), 1), 128)
    sub = lambda d: _round_up(max(int(d), 1), 8)

    try:
        cap = int(getattr(pltpu.get_tpu_info(), "vmem_capacity_bytes", 0)) or (64 << 20)
    except Exception:
        cap = 64 << 20
    # ~45% of physical VMEM, capped: v5e/v6e (128 MiB) -> 48 MiB, v7x (64 MiB) -> ~28 MiB.
    budget = min(int(cap * 0.45), 48 << 20)

    def footprint(tb: int, tpp: int) -> int:
        x_blk = tb * sub(tpp) * lane(ps) * itemsize    # x tile (lane-padded ps)
        o_blk = tb * sub(tpp) * lane(E) * itemsize     # out tile
        w_cst = sub(ps) * lane(E) * itemsize           # w.T
        pe_cst = sub(tpp) * lane(E) * 4                # pe + bias (f32)
        y_tmp = tb * sub(tpp) * lane(E) * 4            # f32 dot result temporary
        wb_tmp = tb * sub(ps) * lane(E) * itemsize     # broadcast weight temp
        return 2 * (x_blk + o_blk + w_cst + pe_cst) + y_tmp + wb_tmp

    # Patch tile: whole patch axis unless even a minimal batch tile overflows.
    tpp = P
    tb_min = min(N, 8)
    while tpp > 8 and footprint(tb_min, tpp) > budget:
        tpp = max(8, _round_up(tpp // 2, 8))

    # Batch tile: grow while it fits; keep >= 2 batch steps when N allows so the
    # "parallel" batch axis can shard across both TensorCores on v7x.
    if N >= 16:
        tb_cap = min(_round_up((N + 1) // 2, 8), 1024)
    else:
        tb_cap = N
    tb = tb_min
    while tb * 2 <= tb_cap and footprint(tb * 2, tpp) <= budget:
        tb *= 2

    vmem_limit = int(min(cap, max(footprint(tb, tpp) + (8 << 20), 32 << 20)))
    return tb, tpp, vmem_limit


@functools.partial(
    jax.jit,
    static_argnames=("patch_size", "embed_dim", "out_dtype", "compute_dtype"),
)
def patch_embedding_forward(
    x, w, b, *, patch_size: int, embed_dim: int,
    out_dtype=jnp.float32, compute_dtype=jnp.float32,
):
    """Forward pass of PatchEmbedding.

    x : (N, G) float32
    w : (embed_dim, patch_size) float32  (nn.Linear weight layout)
    b : (embed_dim,) float32
    Returns (out, n_patch, pad_len) with out : (N, n_patch, embed_dim).
    """
    N, G = x.shape
    n_patch = -(-G // patch_size)
    pad_len = n_patch * patch_size - G

    # Zero-pad the gene tail exactly like the PyTorch module (only when needed);
    # the subsequent reshape of a contiguous row-major array is free.
    if pad_len > 0:
        x = jnp.pad(x, ((0, 0), (0, pad_len)))
    x3 = x.reshape(N, n_patch, patch_size)

    w_t = jnp.transpose(w)                                        # (ps, E)
    pe_b = _sinusoidal_pe(n_patch, embed_dim) + b[None, :]        # (P, E), bias folded

    TB, TPP, vmem_limit = _pick_tiles(
        N, n_patch, patch_size, embed_dim, x.dtype.itemsize
    )
    grid = (pl.cdiv(N, TB), pl.cdiv(n_patch, TPP))

    out = pl.pallas_call(
        functools.partial(_patch_embed_kernel, compute_dtype=compute_dtype),
        out_shape=jax.ShapeDtypeStruct((N, n_patch, embed_dim), out_dtype),
        grid_spec=pltpu.PrefetchScalarGridSpec(
            num_scalar_prefetch=0,
            grid=grid,
            in_specs=[
                pl.BlockSpec((TB, TPP, patch_size), lambda i, j: (i, j, 0)),  # x
                pl.BlockSpec((patch_size, embed_dim), lambda i, j: (0, 0)),   # w.T
                pl.BlockSpec((TPP, embed_dim), lambda i, j: (j, 0)),          # pe+b
            ],
            out_specs=pl.BlockSpec((TB, TPP, embed_dim), lambda i, j: (i, j, 0)),
        ),
        compiler_params=pltpu.CompilerParams(
            dimension_semantics=("parallel", "parallel"),
            vmem_limit_bytes=vmem_limit,
        ),
    )(x3, w_t, pe_b)

    return out, n_patch, pad_len


if __name__ == "__main__":
    # Small, deterministic example consistent with the module:
    # gene_dim=60 genes, patch_size=8 -> n_patch=8, pad_len=4; embed_dim=32.
    N = 2
    gene_dim = 60
    patch_size = 8
    embed_dim = 32

    key = jax.random.PRNGKey(0)
    kx, kw, kb = jax.random.split(key, 3)

    x = jax.random.normal(kx, (N, gene_dim), dtype=jnp.float32)
    # Deterministic nn.Linear-style init (uniform in +-1/sqrt(fan_in)).
    bound = 1.0 / (patch_size ** 0.5)
    w = jax.random.uniform(kw, (embed_dim, patch_size), jnp.float32, -bound, bound)
    b = jax.random.uniform(kb, (embed_dim,), jnp.float32, -bound, bound)

    out, n_patch, pad_len = patch_embedding_forward(
        x, w, b, patch_size=patch_size, embed_dim=embed_dim
    )
    out = jax.block_until_ready(out)
    n_patch = int(n_patch)
    pad_len = int(pad_len)

    # Pure-JAX reference check (same math as the PyTorch module, no Pallas).
    x_pad = jnp.concatenate([x, jnp.zeros((N, pad_len), jnp.float32)], axis=1)
    ref = x_pad.reshape(N, n_patch, patch_size) @ w.T + b
    ref = ref + _sinusoidal_pe(n_patch, embed_dim)[None]

    assert out.shape == (N, n_patch, embed_dim)
    assert jnp.allclose(out, ref, atol=1e-5, rtol=1e-5)

    print("KERNEL_OK")
</pallas_src>

<mosaic_0001>
module attributes {stable_mosaic.version = 11 : i64} {
  func.func @_patch_embed_kernel(%arg0: i32, %arg1: i32, %arg2: memref<2x8x8xf32, #tpu.memory_space<vmem>>, %arg3: memref<8x32xf32, #tpu.memory_space<vmem>>, %arg4: memref<8x32xf32, #tpu.memory_space<vmem>>, %arg5: memref<2x8x32xf32, #tpu.memory_space<vmem>>) attributes {dimension_semantics = [#tpu.dimension_semantics<parallel>, #tpu.dimension_semantics<parallel>], iteration_bounds = array<i64: 1, 1>, scalar_prefetch = 0 : i64, scratch_operands = 0 : i64, tpu.core_type = #tpu.core_type<tc>, window_params = [{transform_indices = @transform_0, window_bounds = array<i64: 2, 8, 8>}, {pipeline_mode = #tpu.pipeline_mode<synchronous>, transform_indices = @transform_1, window_bounds = array<i64: 8, 32>}, {transform_indices = @transform_2, window_bounds = array<i64: 8, 32>}, {transform_indices = @transform_3, window_bounds = array<i64: 2, 8, 32>}]} {
    %c0 = arith.constant 0 : index
    %c0_0 = arith.constant 0 : index
    %c0_1 = arith.constant 0 : index
    %0 = vector.load %arg2[%c0, %c0_0, %c0_1] : memref<2x8x8xf32, #tpu.memory_space<vmem>>, vector<2x8x8xf32>
    %c0_2 = arith.constant 0 : index
    %c0_3 = arith.constant 0 : index
    %1 = vector.load %arg3[%c0_2, %c0_3] : memref<8x32xf32, #tpu.memory_space<vmem>>, vector<8x32xf32>
    %2 = vector.shape_cast %1 : vector<8x32xf32> to vector<1x8x32xf32>
    %3 = vector.shape_cast %2 : vector<1x8x32xf32> to vector<1x8x32xf32>
    %4 = vector.broadcast %3 : vector<1x8x32xf32> to vector<2x8x32xf32>
    %cst = arith.constant dense<0.000000e+00> : vector<2x8x32xf32>
    %5 = tpu.matmul %0, %4, %cst {dimension_numbers = #tpu.dot_dimension_numbers<[2], [1], [1], [2], [0, 0, 0, 1, 1, 2], [0], [0]>} : vector<2x8x8xf32>, vector<2x8x32xf32>, vector<2x8x32xf32> -> vector<2x8x32xf32>
    %c0_4 = arith.constant 0 : index
    %c0_5 = arith.constant 0 : index
    %6 = vector.load %arg4[%c0_4, %c0_5] : memref<8x32xf32, #tpu.memory_space<vmem>>, vector<8x32xf32>
    %7 = vector.shape_cast %6 : vector<8x32xf32> to vector<1x8x32xf32>
    %8 = vector.broadcast %7 : vector<1x8x32xf32> to vector<2x8x32xf32>
    %9 = arith.addf %5, %8 : vector<2x8x32xf32>
    %c0_6 = arith.constant 0 : index
    %c0_7 = arith.constant 0 : index
    %c0_8 = arith.constant 0 : index
    %10 = vector.load %arg5[%c0_6, %c0_7, %c0_8] : memref<2x8x32xf32, #tpu.memory_space<vmem>>, vector<2x8x32xf32>
    tpu.vector_store %arg5[%c0_6, %c0_7, %c0_8], %9 {strides = array<i32>} : memref<2x8x32xf32, #tpu.memory_space<vmem>>, vector<2x8x32xf32>,
    return
  }
  func.func @transform_0(%arg0: i32, %arg1: i32) -> (i32, i32, i32) {
    %c0_i32 = arith.constant 0 : i32
    %c0_i32_0 = arith.constant 0 : i32
    return %arg0, %arg1, %c0_i32 : i32, i32, i32
  }
  func.func @transform_1(%arg0: i32, %arg1: i32) -> (i32, i32) {
    %c0_i32 = arith.constant 0 : i32
    %c0_i32_0 = arith.constant 0 : i32
    %c0_i32_1 = arith.constant 0 : i32
    return %c0_i32, %c0_i32_0 : i32, i32
  }
  func.func @transform_2(%arg0: i32, %arg1: i32) -> (i32, i32) {
    %c0_i32 = arith.constant 0 : i32
    %c0_i32_0 = arith.constant 0 : i32
    return %arg1, %c0_i32 : i32, i32
  }
  func.func @transform_3(%arg0: i32, %arg1: i32) -> (i32, i32, i32) {
    %c0_i32 = arith.constant 0 : i32
    %c0_i32_0 = arith.constant 0 : i32
    return %arg0, %arg1, %c0_i32 : i32, i32, i32
  }
}

</mosaic_0001>

<bundles_post_ra>
// kernel: patch_embedding_forward.1
= control target key start
LH: loop header
LB: loop body
LE: loop exit
PB: predicated region body
PF: predicated region fallthrough
CT: control target
= control target key end

     0   :  { %vm19_vm0 = vcmask 64512   ;;  %s156_s0 = inlined_call_operand.vmem [shape: f32[2,8,8], index: 0, kind: input, shape index: {}]   ;;  %s157_s1 = inlined_call_operand.vmem [shape: f32[8,32], index: 1, kind: input, shape index: {}]   ;;  %s158_s2 = inlined_call_operand.vmem [shape: f32[8,32], index: 2, kind: input, shape index: {}]   ;;  %s159_s3 = inlined_call_operand.hbm [shape: f32[2,8,32], index: 3, kind: output, shape index: {}]  }
   0x1   :  { %v17_v0 = vld [vmem:[%s157_s1] sm:$0xff]  ;;  %v16_v2 = vld [vmem:[%s156_s0 + $0x8] sm:$0xff] }
   0x2   :  { %v15_v1 = vld [vmem:[%s156_s0] sm:$0xff]  ;;  %38 = vmatpush.msra.mxu0 %v17_v0  ;;  %61 = vmatpush.msra.mxu1 %v17_v0 }
   0x3   :  { %8 = vsyncpa [#allocation3], 0  ;;  %87 = vmatmul.msk.f32.vlgmr.msra.gmra.mxu0 %vm19_vm0, %v15_v1  ;;  %88 = vmatmul.msk.f32.vlgmr.msra.gmra.mxu1 %vm19_vm0, %v16_v2  ;;  %v18_v3 = vld [vmem:[%s158_s2] sm:$0xff]  ;;  %s118_s20 = smov [#allocation2]   ;;  %s75_s23 = sshll.u32 %s159_s3, 4  ;;  %vm66_vm1 = vcmask 261120   ;;  %s76_s23 = int_to_ptr.hbm [resolvable:$true] %s75_s23 }
   0x4   :  { %s73_s1 = sshll.u32 %s118_s20, 4  ;;  %s119_s0 = smov 128   ;;  %s74_s1 = int_to_ptr.vmem [resolvable:$true] %s73_s1 }
   0x5   :  { %s120_s24 = smov 8  }
  0x80   :  { %v40_v4 = vpop.f32.mrf.mxu0  ;;  %v63_v5 = vpop.f32.mrf.mxu1 }
  0x81   :  { %v41_v6 = vadd.f32 %v40_v4, %v18_v3  ;;  %v64_v7 = vadd.f32 %v63_v5, %v18_v3 }
  0x83   :  { %67 = vst.msk [vmem:[#allocation2] sm:$0xff] %vm66_vm1, %v41_v6 }
  0x84   :  { %68 = vst.msk [vmem:[#allocation2 + $0x8] sm:$0xff] %vm66_vm1, %v64_v7 }
  0x85   :  { %81 = dma.vmem_to_hbm [thread:$0]  %s74_s1, 256, %s76_s23, [#allocation3], %s119_s0, %s119_s0, %s120_s24  }
  0x86   :  { %116 = dma.done.wait [#allocation3], 256  }
  0x87   :  { %117 = vsyncadd [#allocation3], 4294967040 }
  0x88   :  { %86 = vsyncpa [#allocation3], 1 }

</bundles_post_ra>
